<compile_context>
chip_gen: v7x
topology: tpu7x:2x2x1
jax: 0.10.0
libtpu: 0.0.40
codegen_flags: <defaults>
</compile_context>

<pallas_src>
import jax
import jax.numpy as jnp
from jax import lax
from jax.experimental import pallas as pl
from jax.experimental.pallas import tpu as pltpu

LEAKY_SLOPE = 0.01  # ABN default negative_slope
BN_EPS = 1e-5


def _tap_shifts(Wp):
    # flat offsets of the 3x3 taps on a row-major (Hp, Wp) grid, tap-major (ky, kx)
    return [(dy - 1) * Wp + (dx - 1) for dy in range(3) for dx in range(3)]


def make_residual_block_kernel(Cin, C0, C1, Wp, F, Lt):
    shifts = _tap_shifts(Wp)

    def kernel(patches_ref, w1_ref, w2_ref, wp_ref, bsum_ref, mask_ref,
               out_ref, y1pad_ref, im2col2_ref):
        # patches_ref : (9*Cin+1, Lt) bf16  conv1 im2col (built in wrapper) + ones row
        # w1_ref      : (C0, 9*Cin+1) bf16  conv1 weights, BN1 scale+bias folded
        # w2_ref      : (C1, 9*C0)    f32   conv2 weights, BN2 scale folded
        # wp_ref      : (C1, Cin)     bf16  1x1 projection weights, proj_bn scale folded
        # bsum_ref    : (C1, 1)       f32   b2 + bp (folded BN biases)
        # mask_ref    : (1, Lt)       f32   1.0 on interior pixels, 0.0 elsewhere
        # out_ref     : (C1, Lt)      f32
        # y1pad_ref   : (C0, Lt+2F)   f32   flat-padded activation scratch
        # im2col2_ref : (9*C0, Lt)    f32   conv2 im2col staging scratch

        # ---- conv1 (+ folded bn1 scale & bias): one MXU matmul, K = 9*Cin + 1 ----
        y1 = jnp.dot(w1_ref[...], patches_ref[...],
                     preferred_element_type=jnp.float32)
        y1 = jnp.where(y1 >= 0, y1, LEAKY_SLOPE * y1)      # bn1 activation: leaky_relu
        y1 = y1 * mask_ref[...]                            # zero ring/tail -> conv2 padding

        # flat-padded activation buffer; only the tiny halo strips need zeroing
        y1pad_ref[:, 0:F] = jnp.zeros((C0, F), jnp.float32)
        y1pad_ref[:, Lt + F:Lt + 2 * F] = jnp.zeros((C0, F), jnp.float32)
        y1pad_ref[:, F:F + Lt] = y1

        # ---- conv2 operand assembled in scratch (no concat materialization) ----
        for t, s in enumerate(shifts):
            im2col2_ref[t * C0:(t + 1) * C0, :] = y1pad_ref[:, F + s:F + s + Lt]

        # ---- conv2 (+ folded bn2 scale): one MXU matmul, K = 9*C0 ----
        y2 = jnp.dot(w2_ref[...], im2col2_ref[...],
                     preferred_element_type=jnp.float32)

        # ---- projection shortcut: 1x1 conv (+ folded proj_bn scale) ----
        # center-tap rows of the conv1 im2col operand are exactly x at every position
        xc = patches_ref[4 * Cin:5 * Cin, :]
        res = jnp.dot(wp_ref[...], xc, preferred_element_type=jnp.float32)

        # ---- sum + combined bias + final activation (bn1.activation == leaky_relu) ----
        s_out = y2 + res + bsum_ref[...]
        out_ref[...] = jnp.where(s_out >= 0, s_out, LEAKY_SLOPE * s_out)

    return kernel


def fold_bn(gamma, beta, mean, var):
    scale = gamma / jnp.sqrt(var + BN_EPS)
    bias = beta - mean * scale
    return scale, bias


def residual_block_forward(x_nchw, params):
    """ResidualBlock forward (eval-mode BN, last=False) via the Pallas kernel."""
    x_nchw = x_nchw.astype(jnp.float32)
    N, Cin, H, W = x_nchw.shape
    Hp, Wp = H + 2, W + 2
    L = Hp * Wp                       # flat padded spatial length per image
    F = Wp + 1                        # halo so all 9 tap shifts stay in bounds
    NL = N * L                        # whole batch on the lane axis
    Lt = ((NL + 127) // 128) * 128    # lane-dense: pad flat axis to multiple of 128
    shifts = _tap_shifts(Wp)

    s1, b1 = fold_bn(*params["bn1"])
    s2, b2 = fold_bn(*params["bn2"])
    sp, bp = fold_bn(*params["proj_bn"])

    # Fold BN scales into conv weights; reorder OIHW -> (O, ky, kx, I) so the K axis
    # matches the tap-major im2col row order (tap*Cin + c).
    w1 = params["conv1_w"] * s1[:, None, None, None]            # (C0, Cin, 3, 3)
    C0 = w1.shape[0]
    w1 = jnp.transpose(w1, (0, 2, 3, 1)).reshape(C0, 9 * Cin)
    w1p = jnp.concatenate([w1, b1.reshape(C0, 1)], axis=1).astype(jnp.bfloat16)

    w2 = params["conv2_w"] * s2[:, None, None, None]            # (C1, C0, 3, 3)
    C1 = w2.shape[0]
    w2 = jnp.transpose(w2, (0, 2, 3, 1)).reshape(C1, 9 * C0).astype(jnp.float32)

    wp = (params["proj_w"][:, :, 0, 0] * sp[:, None]).astype(jnp.bfloat16)  # (C1, Cin)
    bsum = (b2 + bp).reshape(C1, 1).astype(jnp.float32)

    # Channel-major flat layout, images contiguous on the lane axis.
    xpad = jnp.pad(x_nchw, ((0, 0), (0, 0), (1, 1), (1, 1)))    # (N, Cin, Hp, Wp)
    xflat = jnp.transpose(xpad, (1, 0, 2, 3)).reshape(Cin, NL)  # (Cin, N*L)
    xg = jnp.pad(xflat, ((0, 0), (F, F)))                       # global halo for shifts

    # conv1 im2col operand built HBM-side by XLA (cheap, pipelined DMA); the final
    # ones row folds the bn1 bias into the matmul.
    patches = jnp.concatenate([xg[:, F + s:F + s + NL] for s in shifts], axis=0)
    patches = jnp.concatenate([patches, jnp.ones((1, NL), patches.dtype)], axis=0)
    patches = jnp.pad(patches, ((0, 0), (0, Lt - NL))).astype(jnp.bfloat16)

    # Interior mask: 1 on real pixels, 0 on the padded ring and the lane-padding tail.
    yy = jnp.arange(Hp)[:, None]
    xx = jnp.arange(Wp)[None, :]
    interior = (yy >= 1) & (yy <= H) & (xx >= 1) & (xx <= W)
    mask = jnp.tile(interior.astype(jnp.float32).reshape(L), (N,))
    mask = jnp.pad(mask, (0, Lt - NL)).reshape(1, Lt)

    kernel = make_residual_block_kernel(Cin, C0, C1, Wp, F, Lt)
    K1 = 9 * Cin + 1

    out_flat = pl.pallas_call(
        kernel,
        out_shape=jax.ShapeDtypeStruct((C1, Lt), jnp.float32),
        grid=(1,),                                  # single step: whole batch at once
        in_specs=[
            pl.BlockSpec((K1, Lt), lambda i: (0, 0)),        # conv1 im2col (+ ones row)
            pl.BlockSpec((C0, K1), lambda i: (0, 0)),        # w1 (+ bias column)
            pl.BlockSpec((C1, 9 * C0), lambda i: (0, 0)),    # w2
            pl.BlockSpec((C1, Cin), lambda i: (0, 0)),       # wp
            pl.BlockSpec((C1, 1), lambda i: (0, 0)),         # b2 + bp
            pl.BlockSpec((1, Lt), lambda i: (0, 0)),         # interior mask
        ],
        out_specs=pl.BlockSpec((C1, Lt), lambda i: (0, 0)),
        scratch_shapes=[
            pltpu.VMEM((C0, Lt + 2 * F), jnp.float32),       # flat-padded activation
            pltpu.VMEM((9 * C0, Lt), jnp.float32),           # conv2 im2col staging
        ],
        compiler_params=pltpu.CompilerParams(
            dimension_semantics=("arbitrary",),
        ),
    )(patches, w1p, w2, wp, bsum, mask)

    # Back to NCHW: drop lane padding, un-flatten, drop the halo ring.
    out = out_flat[:, :NL].reshape(C1, N, Hp, Wp)
    out = jnp.transpose(out, (1, 0, 2, 3))[:, :, 1:H + 1, 1:W + 1]
    return out


# ---------------- pure-JAX f32 reference (for a sanity check) ----------------
def reference_forward(x, params):
    def conv(inp, w, pad):
        return lax.conv_general_dilated(
            inp, w, (1, 1), [(pad, pad), (pad, pad)],
            dimension_numbers=("NCHW", "OIHW", "NCHW"))

    def bn(inp, p):
        g, b, m, v = (a.reshape(1, -1, 1, 1) for a in p)
        return (inp - m) / jnp.sqrt(v + BN_EPS) * g + b

    def lrelu(v):
        return jnp.where(v >= 0, v, LEAKY_SLOPE * v)

    x = x.astype(jnp.float32)
    y = lrelu(bn(conv(x, params["conv1_w"], 1), params["bn1"]))
    y = bn(conv(y, params["conv2_w"], 1), params["bn2"])
    r = bn(conv(x, params["proj_w"], 0), params["proj_bn"])
    return lrelu(y + r)


if __name__ == "__main__":
    # Module config: in_channels=4, channels=[8, 8], stride=1, dilation=1, groups=1
    N, Cin, H, W = 2, 4, 16, 16
    C0, C1 = 8, 8

    key = jax.random.PRNGKey(0)
    ks = jax.random.split(key, 12)

    def bn_params(k, c):
        k1, k2, k3, k4 = jax.random.split(k, 4)
        gamma = 1.0 + 0.1 * jax.random.normal(k1, (c,), jnp.float32)
        beta = 0.1 * jax.random.normal(k2, (c,), jnp.float32)
        mean = 0.1 * jax.random.normal(k3, (c,), jnp.float32)
        var = 1.0 + 0.1 * jax.random.uniform(k4, (c,), jnp.float32)
        return (gamma, beta, mean, var)

    params = {
        "conv1_w": 0.1 * jax.random.normal(ks[0], (C0, Cin, 3, 3), jnp.float32),
        "conv2_w": 0.1 * jax.random.normal(ks[1], (C1, C0, 3, 3), jnp.float32),
        "proj_w": 0.1 * jax.random.normal(ks[2], (C1, Cin, 1, 1), jnp.float32),
        "bn1": bn_params(ks[3], C0),
        "bn2": bn_params(ks[4], C1),
        "proj_bn": bn_params(ks[5], C1),
    }

    x = jax.random.normal(ks[6], (N, Cin, H, W), jnp.float32)

    out = residual_block_forward(x, params)
    out = jax.block_until_ready(out)

    ref = reference_forward(x, params)
    assert out.shape == (N, C1, H, W)
    # bf16 MXU operands for conv1/proj (f32 accumulation) -> slightly loose tolerance
    assert jnp.allclose(out, ref, atol=2e-2, rtol=2e-2), "mismatch vs reference"

    print("KERNEL_OK")
</pallas_src>

<mosaic_0001>
module attributes {stable_mosaic.version = 11 : i64} {
  func.func @kernel(%arg0: i32, %arg1: memref<37x768xbf16, #tpu.memory_space<vmem>>, %arg2: memref<8x37xbf16, #tpu.memory_space<vmem>>, %arg3: memref<8x72xf32, #tpu.memory_space<vmem>>, %arg4: memref<8x4xbf16, #tpu.memory_space<vmem>>, %arg5: memref<8x1xf32, #tpu.memory_space<vmem>>, %arg6: memref<1x768xf32, #tpu.memory_space<vmem>>, %arg7: memref<8x768xf32, #tpu.memory_space<vmem>>, %arg8: memref<8x806xf32, #tpu.memory_space<vmem>>, %arg9: memref<72x768xf32, #tpu.memory_space<vmem>>) attributes {dimension_semantics = [#tpu.dimension_semantics<arbitrary>], iteration_bounds = array<i64: 1>, scalar_prefetch = 0 : i64, scratch_operands = 2 : i64, tpu.core_type = #tpu.core_type<tc>, window_params = [{pipeline_mode = #tpu.pipeline_mode<synchronous>, transform_indices = @transform_0, window_bounds = array<i64: 37, 768>}, {pipeline_mode = #tpu.pipeline_mode<synchronous>, transform_indices = @transform_1, window_bounds = array<i64: 8, 37>}, {pipeline_mode = #tpu.pipeline_mode<synchronous>, transform_indices = @transform_2, window_bounds = array<i64: 8, 72>}, {pipeline_mode = #tpu.pipeline_mode<synchronous>, transform_indices = @transform_3, window_bounds = array<i64: 8, 4>}, {pipeline_mode = #tpu.pipeline_mode<synchronous>, transform_indices = @transform_4, window_bounds = array<i64: 8, 1>}, {pipeline_mode = #tpu.pipeline_mode<synchronous>, transform_indices = @transform_5, window_bounds = array<i64: 1, 768>}, {pipeline_mode = #tpu.pipeline_mode<synchronous>, transform_indices = @transform_6, window_bounds = array<i64: 8, 768>}]} {
    %c0 = arith.constant 0 : index
    %c0_0 = arith.constant 0 : index
    %0 = vector.load %arg2[%c0, %c0_0] : memref<8x37xbf16, #tpu.memory_space<vmem>>, vector<8x37xbf16>
    %c0_1 = arith.constant 0 : index
    %c0_2 = arith.constant 0 : index
    %1 = vector.load %arg1[%c0_1, %c0_2] : memref<37x768xbf16, #tpu.memory_space<vmem>>, vector<37x768xbf16>
    %cst = arith.constant dense<0.000000e+00> : vector<8x768xf32>
    %2 = tpu.matmul %0, %1, %cst {dimension_numbers = #tpu.dot_dimension_numbers<[1], [0], [0], [1], [0, 0, 1, 1], [], []>} : vector<8x37xbf16>, vector<37x768xbf16>, vector<8x768xf32> -> vector<8x768xf32>
    %cst_3 = arith.constant 0.000000e+00 : f32
    %3 = vector.broadcast %cst_3 : f32 to vector<8x768xf32>
    %4 = arith.cmpf oge, %2, %3 : vector<8x768xf32>
    %cst_4 = arith.constant 0.00999999977 : f32
    %5 = vector.broadcast %cst_4 : f32 to vector<8x768xf32>
    %6 = arith.mulf %5, %2 : vector<8x768xf32>
    %7 = arith.select %4, %2, %6 : vector<8x768xi1>, vector<8x768xf32>
    %c0_5 = arith.constant 0 : index
    %c0_6 = arith.constant 0 : index
    %8 = vector.load %arg6[%c0_5, %c0_6] : memref<1x768xf32, #tpu.memory_space<vmem>>, vector<1x768xf32>
    %9 = vector.broadcast %8 : vector<1x768xf32> to vector<8x768xf32>
    %10 = arith.mulf %7, %9 : vector<8x768xf32>
    %cst_7 = arith.constant 0.000000e+00 : f32
    %11 = vector.broadcast %cst_7 : f32 to vector<8x19xf32>
    %c0_8 = arith.constant 0 : index
    %c0_9 = arith.constant 0 : index
    %12 = vector.load %arg8[%c0_8, %c0_9] : memref<8x806xf32, #tpu.memory_space<vmem>>, vector<8x19xf32>
    tpu.vector_store %arg8[%c0_8, %c0_9], %11 {strides = array<i32>} : memref<8x806xf32, #tpu.memory_space<vmem>>, vector<8x19xf32>,
    %cst_10 = arith.constant 0.000000e+00 : f32
    %13 = vector.broadcast %cst_10 : f32 to vector<8x19xf32>
    %c0_11 = arith.constant 0 : index
    %c787 = arith.constant 787 : index
    %14 = vector.load %arg8[%c0_11, %c787] : memref<8x806xf32, #tpu.memory_space<vmem>>, vector<8x19xf32>
    tpu.vector_store %arg8[%c0_11, %c787], %13 {strides = array<i32>} : memref<8x806xf32, #tpu.memory_space<vmem>>, vector<8x19xf32>,
    %c0_12 = arith.constant 0 : index
    %c19 = arith.constant 19 : index
    %15 = vector.load %arg8[%c0_12, %c19] : memref<8x806xf32, #tpu.memory_space<vmem>>, vector<8x768xf32>
    tpu.vector_store %arg8[%c0_12, %c19], %10 {strides = array<i32>} : memref<8x806xf32, #tpu.memory_space<vmem>>, vector<8x768xf32>,
    %c0_13 = arith.constant 0 : index
    %c0_14 = arith.constant 0 : index
    %16 = vector.load %arg8[%c0_13, %c0_14] : memref<8x806xf32, #tpu.memory_space<vmem>>, vector<8x768xf32>
    %c0_15 = arith.constant 0 : index
    %c0_16 = arith.constant 0 : index
    %17 = vector.load %arg9[%c0_15, %c0_16] : memref<72x768xf32, #tpu.memory_space<vmem>>, vector<8x768xf32>
    tpu.vector_store %arg9[%c0_15, %c0_16], %16 {strides = array<i32>} : memref<72x768xf32, #tpu.memory_space<vmem>>, vector<8x768xf32>,
    %c0_17 = arith.constant 0 : index
    %c1 = arith.constant 1 : index
    %18 = vector.load %arg8[%c0_17, %c1] : memref<8x806xf32, #tpu.memory_space<vmem>>, vector<8x768xf32>
    %c8 = arith.constant 8 : index
    %c0_18 = arith.constant 0 : index
    %19 = vector.load %arg9[%c8, %c0_18] : memref<72x768xf32, #tpu.memory_space<vmem>>, vector<8x768xf32>
    tpu.vector_store %arg9[%c8, %c0_18], %18 {strides = array<i32>} : memref<72x768xf32, #tpu.memory_space<vmem>>, vector<8x768xf32>,
    %c0_19 = arith.constant 0 : index
    %c2 = arith.constant 2 : index
    %20 = vector.load %arg8[%c0_19, %c2] : memref<8x806xf32, #tpu.memory_space<vmem>>, vector<8x768xf32>
    %c16 = arith.constant 16 : index
    %c0_20 = arith.constant 0 : index
    %21 = vector.load %arg9[%c16, %c0_20] : memref<72x768xf32, #tpu.memory_space<vmem>>, vector<8x768xf32>
    tpu.vector_store %arg9[%c16, %c0_20], %20 {strides = array<i32>} : memref<72x768xf32, #tpu.memory_space<vmem>>, vector<8x768xf32>,
    %c0_21 = arith.constant 0 : index
    %c18 = arith.constant 18 : index
    %22 = vector.load %arg8[%c0_21, %c18] : memref<8x806xf32, #tpu.memory_space<vmem>>, vector<8x768xf32>
    %c24 = arith.constant 24 : index
    %c0_22 = arith.constant 0 : index
    %23 = vector.load %arg9[%c24, %c0_22] : memref<72x768xf32, #tpu.memory_space<vmem>>, vector<8x768xf32>
    tpu.vector_store %arg9[%c24, %c0_22], %22 {strides = array<i32>} : memref<72x768xf32, #tpu.memory_space<vmem>>, vector<8x768xf32>,
    %c0_23 = arith.constant 0 : index
    %c19_24 = arith.constant 19 : index
    %24 = vector.load %arg8[%c0_23, %c19_24] : memref<8x806xf32, #tpu.memory_space<vmem>>, vector<8x768xf32>
    %c32 = arith.constant 32 : index
    %c0_25 = arith.constant 0 : index
    %25 = vector.load %arg9[%c32, %c0_25] : memref<72x768xf32, #tpu.memory_space<vmem>>, vector<8x768xf32>
    tpu.vector_store %arg9[%c32, %c0_25], %24 {strides = array<i32>} : memref<72x768xf32, #tpu.memory_space<vmem>>, vector<8x768xf32>,
    %c0_26 = arith.constant 0 : index
    %c20 = arith.constant 20 : index
    %26 = vector.load %arg8[%c0_26, %c20] : memref<8x806xf32, #tpu.memory_space<vmem>>, vector<8x768xf32>
    %c40 = arith.constant 40 : index
    %c0_27 = arith.constant 0 : index
    %27 = vector.load %arg9[%c40, %c0_27] : memref<72x768xf32, #tpu.memory_space<vmem>>, vector<8x768xf32>
    tpu.vector_store %arg9[%c40, %c0_27], %26 {strides = array<i32>} : memref<72x768xf32, #tpu.memory_space<vmem>>, vector<8x768xf32>,
    %c0_28 = arith.constant 0 : index
    %c36 = arith.constant 36 : index
    %28 = vector.load %arg8[%c0_28, %c36] : memref<8x806xf32, #tpu.memory_space<vmem>>, vector<8x768xf32>
    %c48 = arith.constant 48 : index
    %c0_29 = arith.constant 0 : index
    %29 = vector.load %arg9[%c48, %c0_29] : memref<72x768xf32, #tpu.memory_space<vmem>>, vector<8x768xf32>
    tpu.vector_store %arg9[%c48, %c0_29], %28 {strides = array<i32>} : memref<72x768xf32, #tpu.memory_space<vmem>>, vector<8x768xf32>,
    %c0_30 = arith.constant 0 : index
    %c37 = arith.constant 37 : index
    %30 = vector.load %arg8[%c0_30, %c37] : memref<8x806xf32, #tpu.memory_space<vmem>>, vector<8x768xf32>
    %c56 = arith.constant 56 : index
    %c0_31 = arith.constant 0 : index
    %31 = vector.load %arg9[%c56, %c0_31] : memref<72x768xf32, #tpu.memory_space<vmem>>, vector<8x768xf32>
    tpu.vector_store %arg9[%c56, %c0_31], %30 {strides = array<i32>} : memref<72x768xf32, #tpu.memory_space<vmem>>, vector<8x768xf32>,
    %c0_32 = arith.constant 0 : index
    %c38 = arith.constant 38 : index
    %32 = vector.load %arg8[%c0_32, %c38] : memref<8x806xf32, #tpu.memory_space<vmem>>, vector<8x768xf32>
    %c64 = arith.constant 64 : index
    %c0_33 = arith.constant 0 : index
    %33 = vector.load %arg9[%c64, %c0_33] : memref<72x768xf32, #tpu.memory_space<vmem>>, vector<8x768xf32>
    tpu.vector_store %arg9[%c64, %c0_33], %32 {strides = array<i32>} : memref<72x768xf32, #tpu.memory_space<vmem>>, vector<8x768xf32>,
    %c0_34 = arith.constant 0 : index
    %c0_35 = arith.constant 0 : index
    %34 = vector.load %arg3[%c0_34, %c0_35] : memref<8x72xf32, #tpu.memory_space<vmem>>, vector<8x72xf32>
    %c0_36 = arith.constant 0 : index
    %c0_37 = arith.constant 0 : index
    %35 = vector.load %arg9[%c0_36, %c0_37] : memref<72x768xf32, #tpu.memory_space<vmem>>, vector<72x768xf32>
    %cst_38 = arith.constant dense<0.000000e+00> : vector<8x768xf32>
    %36 = tpu.matmul %34, %35, %cst_38 {dimension_numbers = #tpu.dot_dimension_numbers<[1], [0], [0], [1], [0, 0, 1, 1], [], []>} : vector<8x72xf32>, vector<72x768xf32>, vector<8x768xf32> -> vector<8x768xf32>
    %c16_39 = arith.constant 16 : index
    %c0_40 = arith.constant 0 : index
    %37 = vector.load %arg1[%c16_39, %c0_40] : memref<37x768xbf16, #tpu.memory_space<vmem>>, vector<4x768xbf16>
    %c0_41 = arith.constant 0 : index
    %c0_42 = arith.constant 0 : index
    %38 = vector.load %arg4[%c0_41, %c0_42] : memref<8x4xbf16, #tpu.memory_space<vmem>>, vector<8x4xbf16>
    %cst_43 = arith.constant dense<0.000000e+00> : vector<8x768xf32>
    %39 = tpu.matmul %38, %37, %cst_43 {dimension_numbers = #tpu.dot_dimension_numbers<[1], [0], [0], [1], [0, 0, 1, 1], [], []>} : vector<8x4xbf16>, vector<4x768xbf16>, vector<8x768xf32> -> vector<8x768xf32>
    %40 = arith.addf %36, %39 : vector<8x768xf32>
    %c0_44 = arith.constant 0 : index
    %c0_45 = arith.constant 0 : index
    %41 = vector.load %arg5[%c0_44, %c0_45] : memref<8x1xf32, #tpu.memory_space<vmem>>, vector<8x1xf32>
    %42 = vector.broadcast %41 : vector<8x1xf32> to vector<8x768xf32>
    %43 = arith.addf %40, %42 : vector<8x768xf32>
    %cst_46 = arith.constant 0.000000e+00 : f32
    %44 = vector.broadcast %cst_46 : f32 to vector<8x768xf32>
    %45 = arith.cmpf oge, %43, %44 : vector<8x768xf32>
    %cst_47 = arith.constant 0.00999999977 : f32
    %46 = vector.broadcast %cst_47 : f32 to vector<8x768xf32>
    %47 = arith.mulf %46, %43 : vector<8x768xf32>
    %48 = arith.select %45, %43, %47 : vector<8x768xi1>, vector<8x768xf32>
    %c0_48 = arith.constant 0 : index
    %c0_49 = arith.constant 0 : index
    %49 = vector.load %arg7[%c0_48, %c0_49] : memref<8x768xf32, #tpu.memory_space<vmem>>, vector<8x768xf32>
    tpu.vector_store %arg7[%c0_48, %c0_49], %48 {strides = array<i32>} : memref<8x768xf32, #tpu.memory_space<vmem>>, vector<8x768xf32>,
    return
  }
  func.func @transform_0(%arg0: i32) -> (i32, i32) {
    %c0_i32 = arith.constant 0 : i32
    %c0_i32_0 = arith.constant 0 : i32
    %c0_i32_1 = arith.constant 0 : i32
    return %c0_i32, %c0_i32_0 : i32, i32
  }
  func.func @transform_1(%arg0: i32) -> (i32, i32) {
    %c0_i32 = arith.constant 0 : i32
    %c0_i32_0 = arith.constant 0 : i32
    %c0_i32_1 = arith.constant 0 : i32
    return %c0_i32, %c0_i32_0 : i32, i32
  }
  func.func @transform_2(%arg0: i32) -> (i32, i32) {
    %c0_i32 = arith.constant 0 : i32
    %c0_i32_0 = arith.constant 0 : i32
    %c0_i32_1 = arith.constant 0 : i32
    return %c0_i32, %c0_i32_0 : i32, i32
  }
  func.func @transform_3(%arg0: i32) -> (i32, i32) {
    %c0_i32 = arith.constant 0 : i32
    %c0_i32_0 = arith.constant 0 : i32
    %c0_i32_1 = arith.constant 0 : i32
    return %c0_i32, %c0_i32_0 : i32, i32
  }
  func.func @transform_4(%arg0: i32) -> (i32, i32) {
    %c0_i32 = arith.constant 0 : i32
    %c0_i32_0 = arith.constant 0 : i32
    %c0_i32_1 = arith.constant 0 : i32
    return %c0_i32, %c0_i32_0 : i32, i32
  }
  func.func @transform_5(%arg0: i32) -> (i32, i32) {
    %c0_i32 = arith.constant 0 : i32
    %c0_i32_0 = arith.constant 0 : i32
    %c0_i32_1 = arith.constant 0 : i32
    return %c0_i32, %c0_i32_0 : i32, i32
  }
  func.func @transform_6(%arg0: i32) -> (i32, i32) {
    %c0_i32 = arith.constant 0 : i32
    %c0_i32_0 = arith.constant 0 : i32
    %c0_i32_1 = arith.constant 0 : i32
    return %c0_i32, %c0_i32_0 : i32, i32
  }
}

</mosaic_0001>

<bundles_post_ra>
// kernel: tpu_custom_call.1
= control target key start
LH: loop header
LB: loop body
LE: loop exit
PB: predicated region body
PF: predicated region fallthrough
CT: control target
= control target key end

     0   :  { %11 = vsyncpa [#allocation5], 0  ;;  %s1880_s0 = inlined_call_operand.hbm [shape: bf16[37,768], index: 0, kind: input, shape index: {}]   ;;  %s1881_s1 = inlined_call_operand.vmem [shape: bf16[8,37], index: 1, kind: input, shape index: {}]   ;;  %s1882_s2 = inlined_call_operand.vmem [shape: f32[8,72], index: 2, kind: input, shape index: {}]   ;;  %s1883_s3 = inlined_call_operand.vmem [shape: bf16[8,4], index: 3, kind: input, shape index: {}]   ;;  %s1884_s4 = inlined_call_operand.vmem [shape: f32[8,1], index: 4, kind: input, shape index: {}]   ;;  %s1885_s5 = inlined_call_operand.vmem [shape: f32[1,768], index: 5, kind: input, shape index: {}]   ;;  %s1886_s6 = inlined_call_operand.hbm [shape: f32[8,768], index: 6, kind: output, shape index: {}]  }
   0x1   :  { %12 = vsyncpa [#allocation6], 0  ;;  %s1537_s21 = smov [#allocation4]   ;;  %s1489_s25 = scalar_lea.hbm %s1880_s0, 1920 }
   0x2   :  { %s18_s22 = sshll.u32 %s1537_s21, 4  ;;  %p1490_p0 = scmp.ne.s32.totalorder %s1880_s0, %s1489_s25  ;;  %s19_s22 = int_to_ptr.vmem [resolvable:$true] %s18_s22 }
   0x3   :  { %p1493_p1 = scmp.lt.u32.totalorder %s1489_s25, %s1880_s0 }
   0x5   :  { %p1495_p2 = pnand %p1493_p1, %p1490_p0 }
   0x7   :  { %1498 = shalt.err (!%p1495_p2)
}
   0x8   :  { %s1499_s30 = scalar_lea.vmem %s19_s22, 1920  ;;  %p1504_p4 = scmp.lt.s32.totalorder %s19_s22, %s19_s22 }
   0x9   :  { %p1500_p3 = scmp.ne.s32.totalorder %s19_s22, %s1499_s30  ;;  %p1505_p5 = scmp.lt.s32.totalorder %s1499_s30, %s1499_s30 }
   0xb   :  { %p1506_p6 = por %p1505_p5, %p1504_p4 }
   0xd   :  { %p1507_p7 = pnand %p1506_p6, %p1500_p3 }
   0xf   :  { %1510 = shalt.err (!%p1507_p7)
}
  0x10   :  { %s1538_s7 = smov 384   ;;  %s1539_s8 = smov 24  }
  0x11   :  { %24 = dma.hbm_to_vmem [thread:$0]  %s1880_s0, 1920, %s19_s22, [#allocation5], %s1538_s7, %s1538_s7, %s1539_s8  }
  0x12   :  { %1533 = dma.done.wait [#allocation5], 1920  }
  0x13   :  { %1534 = vsyncadd [#allocation5], 4294965376  ;;  %v1540_v0 = vmov 0   ;;  %vm134_vm0 = vcmask 1041408   ;;  %v1459_v1 = vld [vmem:[#allocation4 + $0x4] ss:$24 sps:$4 sm:$0xff]   ;;  %v299_v32 = vlaneseq }
  0x14   :  { %188 = vmatprep.mubr.bf16.mxu0 %v1540_v0  ;;  %229 = vmatprep.mubr.bf16.mxu1 %v1540_v0  ;;  %v1461_v2 = vld [vmem:[#allocation4 + $0xc] ss:$24 sps:$4 sm:$0xff]   ;;  %vm135_vm1 = vcmask 1042432   ;;  %v1541_v3 = vmov 65535   ;;  %v1463_v5 = vld [vmem:[#allocation4] ss:$24 sps:$4 sm:$0xff]  }
  0x15   :  { %1457 = vset.pattern.permute.xlu1 %v1540_v0  ;;  %1458 = vset.pattern.permute.xlu0 %v1540_v0  ;;  %v136_v4 = vsel %vm134_vm0, 4294967295, %v1541_v3  ;;  %v1464_v6 = vld [vmem:[#allocation4 + $0x8] ss:$24 sps:$4 sm:$0xff]   ;;  %v1465_v7 = vld [vmem:[#allocation4 + $0x34] ss:$24 sps:$4 sm:$0xff]   ;;  %vm130_vm2 = vcmask 302080  }
  0x16   :  { %156 = vmatprep.subr.bf16.mxu0 %v1459_v1  ;;  %197 = vmatprep.subr.bf16.mxu1 %v1461_v2  ;;  %v1467_v8 = vld [vmem:[#allocation4 + $0x3c] ss:$24 sps:$4 sm:$0xff]   ;;  %v1469_v9 = vld [vmem:[#allocation4 + $0x30] ss:$24 sps:$4 sm:$0xff]   ;;  %v137_v10 = vsel %vm135_vm1, %v136_v4, 0  ;;  %v300_v33 = vshrl.u32 %v299_v32, 7 }
  0x17   :  { %157 = vmatpush1.bf16.msra.mxu0 %v1463_v5  ;;  %198 = vmatpush1.bf16.msra.mxu1 %v1464_v6  ;;  %v1470_v11 = vld [vmem:[#allocation4 + $0x38] ss:$24 sps:$4 sm:$0xff]   ;;  %v52_v12 = vld [vmem:[#allocation4 + $0x60] sm:$0x77]  ;;  %v53_v13 = vld [vmem:[#allocation4 + $0x68] sm:$0x77] }
  0x18   :  { %158 = vmatprep.subr.bf16.mxu0 %v1465_v7  ;;  %199 = vmatprep.subr.bf16.mxu1 %v1467_v8  ;;  %v1265_v14 = vcombine.high %v52_v12, %v52_v12  ;;  %v1267_v15 = vcombine.high %v53_v13, %v53_v13  ;;  %v1264_v16 = vcombine.low %v52_v12, %v52_v12  ;;  %v1477_v22 = vld [vmem:[#allocation4 + $0x14] ss:$24 sps:$4 sm:$0xff]   ;;  %v39_v24 = vld [vmem:[%s1881_s1] sm:$0xf]  ;;  %v1480_v26 = vld [vmem:[#allocation4 + $0x44] ss:$24 sps:$4 sm:$0xff]  }
  0x19   :  { %v1266_v17 = vcombine.low %v53_v13, %v53_v13  ;;  %v54_v23 = vld [vmem:[#allocation4 + $0x70] sm:$0x77]  ;;  %v1478_v28 = vld [vmem:[#allocation4 + $0x40] ss:$24 sps:$4 sm:$0xff]   ;;  %vm335_vm3 = vcmask 154624   ;;  %v1542_v34 = vmov 0.0  }
  0x1a   :  { %v142_v18 = vand.u32 %v1265_v14, %v137_v10  ;;  %v148_v19 = vand.u32 %v1267_v15, %v137_v10  ;;  %v139_v20 = vand.u32 %v1264_v16, %v137_v10  ;;  %v1475_v25 = vld [vmem:[#allocation4 + $0x10] ss:$24 sps:$4 sm:$0xff]   ;;  %v1269_v27 = vcombine.high %v54_v23, %v54_v23  ;;  %336 = vst.msk [vmem:[#allocation2] sm:$0xff] %vm335_vm3, %v1542_v34  ;;  %v821_v15 = vld [vmem:[#allocation4 + $0x38] sm:$0x33]  ;;  %s1544_s15 = smov 90  }
  0x1b   :  { %159 = vmatpush1.bf16.msra.mxu0 %v1469_v9  ;;  %200 = vmatpush1.bf16.msra.mxu1 %v1470_v11  ;;  %v145_v21 = vand.u32 %v1266_v17, %v137_v10  ;;  %v1268_v29 = vcombine.low %v54_v23, %v54_v23  ;;  %v309_v35 = vsub.s32 2, %v300_v33  ;;  %v301_v36 = vsub.s32 0, %v300_v33  ;;  %v297_v37 = vld [vmem:[%s1885_s5] sm:$0x3f]  ;;  %s1543_s5 = smov 19   ;;  %s1545_s16 = smov 91  }
  0x1c   :  { %160 = vmatprep.subr.bf16.mxu0 %v142_v18  ;;  %201 = vmatprep.subr.bf16.mxu1 %v148_v19  ;;  %v154_v30 = vand.u32 %v1269_v27, %v137_v10  ;;  %v313_v38 = vsub.s32 3, %v300_v33  ;;  %v305_v43 = vsub.s32 1, %v300_v33  ;;  %vm337_vm8 = vcmask 310424   ;;  %s1547_s17 = smov 126   ;;  %s1548_s18 = smov 110  }
  0x1d   :  { %v151_v31 = vand.u32 %v1268_v29, %v137_v10  ;;  %v310_v41 = vrot.slane %v297_v37, %v309_v35  ;;  %v302_v42 = vrot.slane %v297_v37, %v301_v36  ;;  %338 = vst.msk [vmem:[#allocation2 + $0x30] sm:$0xff] %vm337_vm8, %v1542_v34  ;;  %v317_v63 = vsub.s32 4, %v300_v33  ;;  %s1549_s19 = smov 109   ;;  %s1550_s20 = smov 108   ;;  %v820_v35 = vld [vmem:[#allocation4 + $0x30] sm:$0x33] }
  0x1e   :  { %v314_v48 = vrot.slane %v297_v37, %v313_v38  ;;  %v306_v59 = vrot.slane %v297_v37, %v305_v43  ;;  %v321_v2 = vsub.s32 5, %v300_v33  ;;  %vm369_vm11 = vcmask 1047704   ;;  %s1551_s21 = smov 92  }
  0x1f   :  { %161 = vmatpush1.bf16.msra.mxu0 %v139_v20  ;;  %202 = vmatpush1.bf16.msra.mxu1 %v145_v21  ;;  %v318_v4 = vrot.slane %v297_v37, %v317_v63  ;;  %v1276_v17 = vcombine.high %v821_v15, %v821_v15  ;;  %v1275_v18 = vcombine.low %v821_v15, %v821_v15  ;;  %vm839_vm12 = vcmask 31744  }
  0x20   :  { %238 = vmatprep.subr.bf16.mxu0 %v1477_v22  ;;  %v322_v7 = vrot.slane %v297_v37, %v321_v2  ;;  %v1274_v36 = vcombine.high %v820_v35, %v820_v35  ;;  %v1273_v37 = vcombine.low %v820_v35, %v820_v35  ;;  %vm417_vm13 = vcmask 1039360  }
  0x21   :  { %1281 = vmatprep.subr.msk.bf16.mxu1 %vm134_vm0, %v1276_v17  ;;  %v850_v20 = vsel %vm134_vm0, %v1275_v18, 0  ;;  %vm464_vm14 = vcmask 1031168   ;;  %vm511_vm15 = vcmask 900096   ;;  %vm605_vm1 = vcmask 883712  }
  0x22   :  { %1270 = vmatmul.mubr.msk.bf16.vlgmr.msra.gmra.mrb[0].mxu0 %vm130_vm2, %v39_v24  ;;  %1271 = vmatmul.mubr.msk.bf16.vlgmr.msra.gmra.mrb[0].mxu1 %vm130_vm2, %v39_v24  ;;  %v844_v38 = vsel %vm134_vm0, %v1273_v37, 0 }
  0x23   :  { %239 = vmatpush1.bf16.msra.mxu0 %v1475_v25  ;;  %270 = vmatprep.mubr.bf16.mxu0 %v1540_v0 }
  0x24   :  { %240 = vmatprep.subr.bf16.mxu0 %v1480_v26  ;;  %934 = vmatprep.mubr.bf16.mxu1 %v1540_v0  ;;  %v823_v26 = vld [vmem:[%s1883_s3] sm:$0xf]  ;;  %s1546_s3 = smov 127  }
  0x25   :  { %903 = vmatpush1.bf16.msra.mxu1 %v850_v20 }
  0x27   :  { %241 = vmatpush1.bf16.msra.mxu0 %v1478_v28 }
  0x28   :  { %242 = vmatprep.subr.bf16.mxu0 %v154_v30 }
  0x2a   :  { %1282 = vmatmul.mubr.msk.bf16.vlgmr.msra.gmra.mrb[4].mxu1 %vm839_vm12, %v823_v26 }
  0x2b   :  { %243 = vmatpush1.bf16.msra.mxu0 %v151_v31  ;;  %1052 = vmatprep.mubr.f32.mxu1 %v1542_v34 }
  0x2c   :  { %1279 = vmatprep.subr.msk.bf16.mxu0 %vm134_vm0, %v1274_v36 }
  0x2e   :  { %1272 = vmatmul.mubr.msk.bf16.vlgmr.msra.gmra.mrb[4].mxu0 %vm130_vm2, %v39_v24  ;;  %vm699_vm2 = vcmask 744448  }
  0x2f   :  { %893 = vmatprep.mubr.bf16.mxu0 %v1540_v0  ;;  %862 = vmatpush1.bf16.msra.mxu0 %v844_v38 }
  0x36   :  { %1280 = vmatmul.mubr.msk.bf16.vlgmr.msra.gmra.mrb[8].mxu0 %vm839_vm12, %v823_v26 }
  0x37   :  { %975 = vmatprep.mubr.bf16.mxu0 %v1540_v0 }
  0xf5   :  { %v190_v39 = vpop.f32.mrb[0].mxu0  ;;  %v231_v40 = vpop.f32.mrb[0].mxu1 }
  0xf6   :  { %vm279_vm4 = vcmp.ge.f32.partialorder %v190_v39, 0.0  ;;  %v285_v44 = vmul.f32 0.01, %v190_v39  ;;  %vm281_vm5 = vcmp.ge.f32.partialorder %v231_v40, 0.0  ;;  %v287_v45 = vmul.f32 0.01, %v231_v40 }
  0xf7   :  { %v192_v46 = vpop.f32.mrb[1].mxu0  ;;  %v233_v47 = vpop.f32.mrb[1].mxu1 }
  0xf8   :  { %vm280_vm6 = vcmp.ge.f32.partialorder %v192_v46, 0.0  ;;  %v286_v49 = vmul.f32 0.01, %v192_v46  ;;  %v194_v50 = vpop.f32.mrb[2].mxu0  ;;  %vm282_vm7 = vcmp.ge.f32.partialorder %v233_v47, 0.0  ;;  %v235_v51 = vpop.f32.mrb[2].mxu1  ;;  %v293_v52 = vsel %vm281_vm5, %v231_v40, %v287_v45 }
  0xf9   :  { %v288_v53 = vmul.f32 0.01, %v233_v47  ;;  %v195_v54 = vpop.f32.mrb[3].mxu0  ;;  %v236_v55 = vpop.f32.mrb[3].mxu1  ;;  %v331_v56 = vmul.f32 %v310_v41, %v293_v52  ;;  %v291_v57 = vsel %vm279_vm4, %v190_v39, %v285_v44  ;;  %v822_v40 = vld [vmem:[#allocation4 + $0x40] sm:$0x33] }
  0xfa   :  { %v329_v58 = vmul.f32 %v302_v42, %v291_v57  ;;  %v292_v60 = vsel %vm280_vm6, %v192_v46, %v286_v49  ;;  %v1278_v41 = vcombine.high %v822_v40, %v822_v40  ;;  %v1277_v42 = vcombine.low %v822_v40, %v822_v40  ;;  %v1201_v46 = vld [vmem:[%s1884_s4] sm:$0xff] }
  0xfb   :  { %v294_v61 = vsel %vm282_vm7, %v233_v47, %v288_v53  ;;  %349 = vrot.lane.b32.xlu1 %v331_v56, %s1543_s5  ;;  %v330_v1 = vmul.f32 %v306_v59, %v292_v60  ;;  %vm746_vm4 = vcmask 736256   ;;  %vm984_vm5 = vcmask 588800  }
  0xfc   :  { %345 = vrot.lane.b32.xlu0 %v329_v58, %s1543_s5  ;;  %v332_v62 = vmul.f32 %v314_v48, %v294_v61  ;;  %1283 = vmatprep.subr.msk.bf16.mxu0 %vm134_vm0, %v1278_v41  ;;  %v856_v44 = vsel %vm134_vm0, %v1277_v42, 0  ;;  %vm558_vm0 = vcmask 891904  }
  0xfd   :  { %944 = vmatpush1.bf16.msra.mxu0 %v856_v44 }
  0xff   :  { %351 = vrot.lane.b32.xlu1 %v332_v62, %s1543_s5 }
 0x100   :  { %347 = vrot.lane.b32.xlu0 %v330_v1, %s1543_s5  ;;  %1284 = vmatmul.mubr.msk.bf16.vlgmr.msra.gmra.mrb[12].mxu0 %vm839_vm12, %v823_v26 }
 0x101   :  { %v272_v3 = vpop.f32.mrb[4].mxu0  ;;  %1123 = vmatprep.mubr.f32.mxu0 %v1542_v34 }
 0x102   :  { %vm283_vm9 = vcmp.ge.f32.partialorder %v272_v3, 0.0  ;;  %v289_v5 = vmul.f32 0.01, %v272_v3  ;;  %v274_v6 = vpop.f32.mrb[5].mxu0 }
 0x103   :  { %vm284_vm10 = vcmp.ge.f32.partialorder %v274_v6, 0.0  ;;  %v290_v8 = vmul.f32 0.01, %v274_v6  ;;  %v276_v9 = vpop.f32.mrb[6].mxu0 }
 0x104   :  { %v295_v10 = vsel %vm283_vm9, %v272_v3, %v289_v5  ;;  %v277_v11 = vpop.f32.mrb[7].mxu0 }
 0x105   :  { %v296_v12 = vsel %vm284_vm10, %v274_v6, %v290_v8  ;;  %v333_v13 = vmul.f32 %v318_v4, %v295_v10 }
 0x106   :  { %v334_v14 = vmul.f32 %v322_v7, %v296_v12 }
 0x107   :  { %353 = vrot.lane.b32.xlu0 %v333_v13, %s1543_s5 }
 0x108   :  { %355 = vrot.lane.b32.xlu1 %v334_v14, %s1543_s5 }
 0x16d   :  { %v350_v16 = vpop.permute.xlu1 %349 }
 0x16e   :  { %v346_v19 = vpop.permute.xlu0 %345 }
 0x16f   :  { %370 = vst.msk [vmem:[#allocation2] sm:$0xff] %vm369_vm11, %v346_v19 }
 0x171   :  { %v352_v21 = vpop.permute.xlu1 %351 }
 0x172   :  { %v1624_v22 = vsel %vm335_vm3, %v350_v16, %v352_v21  ;;  %v348_v23 = vpop.permute.xlu0 %347 }
 0x173   :  { %v1627_v24 = vsel %vm335_vm3, %v346_v19, %v348_v23  ;;  %v1630_v25 = vsel %vm335_vm3, %v348_v23, %v350_v16 }
 0x174   :  { %v1352_v29 = vpack.i.bf16 %v1630_v25, %v1627_v24 }
 0x176   :  { %v1637_v27 = vld [vmem:[#allocation2] sm:$0xff] }
 0x177   :  { %732 = vrot.lane.b32.xlu0 %v1637_v27, %s1544_s15  ;;  %685 = vrot.lane.b32.xlu1 %v1637_v27, %s1545_s16  ;;  %v1357_v30 = vpack.i.bf16 %v1624_v22, %v1637_v27 }
 0x179   :  { %v354_v28 = vpop.permute.xlu0 %353 }
 0x17a   :  { %v1648_v31 = vsel %vm335_vm3, %v352_v21, %v354_v28  ;;  %v356_v32 = vpop.permute.xlu1 %355 }
 0x17b   :  { %v1651_v33 = vsel %vm335_vm3, %v354_v28, %v356_v32  ;;  %376 = vst.msk [vmem:[#allocation2 + $0x30] sm:$0xff] %vm335_vm3, %v356_v32  ;;  %1353 = vrot.lane.b32.xlu0 %v1352_v29, %s1546_s3  ;;  %1358 = vrot.lane.b32.xlu1 %v1357_v30, %s1546_s3  ;;  %v1422_v43 = vpack.i.bf16 %v1648_v31, %v1624_v22  ;;  %vm652_vm3 = vcmask 752640  }
 0x17c   :  { %v1427_v0 = vpack.i.bf16 %v1651_v33, %v1648_v31 }
 0x17f   :  { %1363 = vrot.lane.b32.xlu0 %v1352_v29, %s1547_s17  ;;  %1368 = vrot.lane.b32.xlu1 %v1352_v29, %s1548_s18 }
 0x182   :  { %v395_v39 = vld [vmem:[#allocation2 + $0x30] sm:$0xff] }
 0x183   :  { %1373 = vrot.lane.b32.xlu0 %v1357_v30, %s1547_s17  ;;  %1378 = vrot.lane.b32.xlu1 %v1357_v30, %s1548_s18  ;;  %v1452_v45 = vpack.i.bf16 %v395_v39, %v1651_v33 }
 0x187   :  { %1383 = vrot.lane.b32.xlu0 %v1352_v29, %s1549_s19  ;;  %1388 = vrot.lane.b32.xlu1 %v1352_v29, %s1550_s20 }
 0x18b   :  { %1393 = vrot.lane.b32.xlu0 %v1357_v30, %s1549_s19  ;;  %1398 = vrot.lane.b32.xlu1 %v1357_v30, %s1550_s20 }
 0x18f   :  { %1403 = vrot.lane.b32.xlu0 %v1352_v29, %s1551_s21  ;;  %1408 = vrot.lane.b32.xlu1 %v1352_v29, %s1545_s16 }
 0x193   :  { %1413 = vrot.lane.b32.xlu0 %v1357_v30, %s1551_s21  ;;  %736 = vrot.lane.b32.xlu1 %v1630_v25, %s1544_s15 }
 0x197   :  { %734 = vrot.lane.b32.xlu0 %v1627_v24, %s1544_s15  ;;  %415 = vrot.lane.b32.xlu1 %v395_v39, %s1546_s3 }
 0x19b   :  { %462 = vrot.lane.b32.xlu0 %v395_v39, %s1547_s17  ;;  %1423 = vrot.lane.b32.xlu1 %v1422_v43, %s1545_s16 }
 0x19f   :  { %509 = vrot.lane.b32.xlu0 %v395_v39, %s1548_s18  ;;  %1428 = vrot.lane.b32.xlu1 %v1427_v0, %s1547_s17 }
 0x1a3   :  { %556 = vrot.lane.b32.xlu0 %v395_v39, %s1549_s19  ;;  %1433 = vrot.lane.b32.xlu1 %v1427_v0, %s1548_s18 }
 0x1a7   :  { %1438 = vrot.lane.b32.xlu1 %v1427_v0, %s1549_s19  ;;  %1418 = vrot.lane.b32.xlu0 %v1427_v0, %s1546_s3 }
 0x1ab   :  { %1443 = vrot.lane.b32.xlu1 %v1427_v0, %s1550_s20  ;;  %603 = vrot.lane.b32.xlu0 %v395_v39, %s1550_s20 }
 0x1af   :  { %1448 = vrot.lane.b32.xlu1 %v1427_v0, %s1551_s21  ;;  %650 = vrot.lane.b32.xlu0 %v395_v39, %s1551_s21 }
 0x1b3   :  { %738 = vrot.lane.b32.xlu1 %v1624_v22, %s1544_s15  ;;  %1453 = vrot.lane.b32.xlu0 %v1452_v45, %s1545_s16 }
 0x1b7   :  { %742 = vrot.lane.b32.xlu1 %v1651_v33, %s1544_s15  ;;  %740 = vrot.lane.b32.xlu0 %v1648_v31, %s1544_s15 }
 0x1bb   :  { %744 = vrot.lane.b32.xlu0 %v395_v39, %s1544_s15  ;;  %1204 = vperm.xlu1 %1457, %v1201_v46  }
 0x1e9   :  { %v1708_v47 = vpop.permute.xlu0 %732  ;;  %v1710_v48 = vpop.permute.xlu1 %685 }
 0x1ed   :  { %v1712_v49 = vpop.permute.xlu0 %1353  ;;  %v1714_v50 = vpop.permute.xlu1 %1358 }
 0x1ee   :  { %v1356_v51 = vunpack.i.h.bf16 %v1712_v49  ;;  %v1355_v52 = vunpack.i.l.bf16 %v1712_v49  ;;  %v1360_v53 = vunpack.i.l.bf16 %v1714_v50 }
 0x1f0   :  { %v418_v54 = vsel %vm417_vm13, %v1360_v53, %v1355_v52  ;;  %v419_v55 = vsel %vm417_vm13, %v1355_v52, %v1356_v51 }
 0x1f1   :  { %v1290_v56 = vpack.c.bf16 %v418_v54, %v1637_v27  ;;  %v1724_v57 = vpop.permute.xlu0 %1363  ;;  %v1726_v58 = vpop.permute.xlu1 %1368  ;;  %v1288_v59 = vpack.c.bf16 %v419_v55, %v1627_v24 }
 0x1f2   :  { %v1366_v60 = vunpack.i.h.bf16 %v1724_v57  ;;  %v1365_v61 = vunpack.i.l.bf16 %v1724_v57  ;;  %v1371_v62 = vunpack.i.h.bf16 %v1726_v58  ;;  %v1370_v63 = vunpack.i.l.bf16 %v1726_v58 }
 0x1f3   :  { %1289 = vmatprep.subr.bf16.mxu1 %v1288_v59 }
 0x1f4   :  { %1291 = vmatpush1.bf16.msra.mxu1 %v1290_v56  ;;  %v466_v1 = vsel %vm464_vm14, %v1365_v61, %v1366_v60  ;;  %v513_v2 = vsel %vm511_vm15, %v1370_v63, %v1371_v62  ;;  %v1798_v56 = vld [vmem:[%s1882_s2] sm:$0xff]  ;;  %s1552_s2 = smov [#allocation7]  }
 0x1f5   :  { %v1739_v3 = vpop.permute.xlu0 %1373  ;;  %v1741_v4 = vpop.permute.xlu1 %1378  ;;  %v1292_v5 = vpack.c.bf16 %v513_v2, %v466_v1  ;;  %s1243_s25 = sshll.u32 %s1552_s2, 4  ;;  %s1244_s25 = int_to_ptr.vmem [resolvable:$true] %s1243_s25 }
 0x1f6   :  { %v1375_v6 = vunpack.i.l.bf16 %v1739_v3  ;;  %v1380_v7 = vunpack.i.l.bf16 %v1741_v4  ;;  %v1376_v1 = vunpack.i.h.bf16 %v1739_v3  ;;  %v1381_v2 = vunpack.i.h.bf16 %v1741_v4  ;;  %s1511_s26 = scalar_lea.vmem %s1244_s25, 768  ;;  %p1516_p9 = scmp.lt.s32.totalorder %s1244_s25, %s1244_s25 }
 0x1f7   :  { %1293 = vmatprep.subr.bf16.mxu1 %v1292_v5  ;;  %p1512_p8 = scmp.ne.s32.totalorder %s1244_s25, %s1511_s26  ;;  %p1517_p10 = scmp.lt.s32.totalorder %s1511_s26, %s1511_s26 }
 0x1f8   :  { %v465_v8 = vsel %vm464_vm14, %v1375_v6, %v1365_v61  ;;  %v512_v9 = vsel %vm511_vm15, %v1380_v7, %v1370_v63  ;;  %v1361_v63 = vunpack.i.h.bf16 %v1714_v50  ;;  %v467_v7 = vsel %vm464_vm14, %v1366_v60, %v1376_v1 }
 0x1f9   :  { %v1294_v10 = vpack.c.bf16 %v512_v9, %v465_v8  ;;  %v1747_v11 = vpop.permute.xlu0 %1383  ;;  %v1749_v12 = vpop.permute.xlu1 %1388  ;;  %p1518_p11 = por %p1517_p10, %p1516_p9 }
 0x1fa   :  { %v1386_v13 = vunpack.i.h.bf16 %v1747_v11  ;;  %v1385_v14 = vunpack.i.l.bf16 %v1747_v11  ;;  %v1391_v15 = vunpack.i.h.bf16 %v1749_v12  ;;  %v1390_v16 = vunpack.i.l.bf16 %v1749_v12 }
 0x1fb   :  { %1295 = vmatpush1.bf16.msra.mxu1 %v1294_v10  ;;  %p1519_p12 = pnand %p1518_p11, %p1512_p8 }
 0x1fc   :  { %v560_v17 = vsel %vm558_vm0, %v1385_v14, %v1386_v13  ;;  %v607_v18 = vsel %vm605_vm1, %v1390_v16, %v1391_v15 }
 0x1fd   :  { %v1761_v19 = vpop.permute.xlu0 %1393  ;;  %v1763_v20 = vpop.permute.xlu1 %1398  ;;  %v1296_v21 = vpack.c.bf16 %v607_v18, %v560_v17 }
 0x1fe   :  { %v1395_v23 = vunpack.i.l.bf16 %v1761_v19  ;;  %v1400_v24 = vunpack.i.l.bf16 %v1763_v20  ;;  %v1396_v50 = vunpack.i.h.bf16 %v1761_v19  ;;  %v1401_v58 = vunpack.i.h.bf16 %v1763_v20 }
 0x1ff   :  { %1297 = vmatprep.subr.bf16.mxu1 %v1296_v21 }
 0x200   :  { %v559_v26 = vsel %vm558_vm0, %v1395_v23, %v1385_v14  ;;  %v606_v27 = vsel %vm605_vm1, %v1400_v24, %v1390_v16  ;;  %v561_v57 = vsel %vm558_vm0, %v1386_v13, %v1396_v50 }
 0x201   :  { %v1298_v28 = vpack.c.bf16 %v606_v27, %v559_v26  ;;  %v1769_v29 = vpop.permute.xlu0 %1403  ;;  %v1771_v30 = vpop.permute.xlu1 %1408 }
 0x202   :  { %v1406_v32 = vunpack.i.h.bf16 %v1769_v29  ;;  %v1405_v35 = vunpack.i.l.bf16 %v1769_v29  ;;  %v1411_v36 = vunpack.i.h.bf16 %v1771_v30  ;;  %v1410_v37 = vunpack.i.l.bf16 %v1771_v30 }
 0x203   :  { %1299 = vmatpush1.bf16.msra.mxu1 %v1298_v28 }
 0x204   :  { %v654_v38 = vsel %vm652_vm3, %v1405_v35, %v1406_v32  ;;  %v701_v39 = vsel %vm699_vm2, %v1410_v37, %v1411_v36  ;;  %v700_v44 = vsel %vm699_vm2, %v1710_v48, %v1410_v37 }
 0x205   :  { %v1783_v40 = vpop.permute.xlu0 %1413  ;;  %v1785_v41 = vpop.permute.xlu1 %736  ;;  %v1300_v42 = vpack.c.bf16 %v701_v39, %v654_v38 }
 0x206   :  { %v1415_v43 = vunpack.i.l.bf16 %v1783_v40 }
 0x207   :  { %1301 = vmatprep.subr.bf16.mxu1 %v1300_v42 }
 0x208   :  { %v653_v0 = vsel %vm652_vm3, %v1415_v43, %v1405_v35  ;;  %v1416_v43 = vunpack.i.h.bf16 %v1783_v40 }
 0x209   :  { %v1302_v45 = vpack.c.bf16 %v700_v44, %v653_v0  ;;  %v735_v46 = vpop.permute.xlu0 %734  ;;  %v416_v52 = vpop.permute.xlu1 %415 }
 0x20a   :  { %v748_v53 = vsel %vm746_vm4, %v735_v46, %v1785_v41  ;;  %v747_v48 = vsel %vm746_vm4, %v1708_v47, %v735_v46  ;;  %v420_v47 = vsel %vm417_vm13, %v1356_v51, %v1361_v63 }
 0x20b   :  { %1303 = vmatpush1.bf16.msra.mxu1 %v1302_v45  ;;  %v1306_v49 = vpack.c.bf16 %v420_v47, %v1630_v25 }
 0x20c   :  { %1004 = vmatprep.subr.mxu1 %v748_v53 }
 0x20d   :  { %v463_v54 = vpop.permute.xlu0 %462  ;;  %v1793_v55 = vpop.permute.xlu1 %1423 }
 0x20e   :  { %v1426_v44 = vunpack.i.h.bf16 %v1793_v55  ;;  %v1425_v0 = vunpack.i.l.bf16 %v1793_v55 }
 0x20f   :  { %1005 = vmatpush1.msra.mxu1 %v747_v48 }
 0x210   :  { %1285 = vmatmul.mubr.msk.f32.vlgmr.msra.gmra.mrb[8].mxu1 %vm984_vm5, %v1798_v56 }
 0x211   :  { %v510_v59 = vpop.permute.xlu0 %509  ;;  %v1429_v61 = vpop.permute.xlu1 %1428  ;;  %1194 = vmatprep.mubr.f32.mxu1 %v1542_v34  ;;  %v514_v34 = vsel %vm511_vm15, %v1371_v62, %v1381_v2 }
 0x212   :  { %v1430_v8 = vunpack.i.l.bf16 %v1429_v61  ;;  %v1431_v4 = vunpack.i.h.bf16 %v1429_v61  ;;  %v1310_v16 = vpack.c.bf16 %v514_v34, %v467_v7 }
 0x214   :  { %v468_v60 = vsel %vm464_vm14, %v1376_v1, %v1430_v8  ;;  %v470_v26 = vsel %vm464_vm14, %v1431_v4, %v463_v54  ;;  %v469_v45 = vsel %vm464_vm14, %v1430_v8, %v1431_v4 }
 0x215   :  { %v557_v5 = vpop.permute.xlu0 %556  ;;  %v1434_v6 = vpop.permute.xlu1 %1433 }
 0x216   :  { %v1435_v3 = vunpack.i.l.bf16 %v1434_v6  ;;  %v1436_v9 = vunpack.i.h.bf16 %v1434_v6 }
 0x218   :  { %v515_v62 = vsel %vm511_vm15, %v1381_v2, %v1435_v3  ;;  %v517_v25 = vsel %vm511_vm15, %v1436_v9, %v510_v59  ;;  %v516_v38 = vsel %vm511_vm15, %v1435_v3, %v1436_v9 }
 0x219   :  { %v1419_v10 = vpop.permute.xlu0 %1418  ;;  %v1439_v14 = vpop.permute.xlu1 %1438  ;;  %v1308_v39 = vpack.c.bf16 %v515_v62, %v468_v60  ;;  %v1324_v42 = vpack.c.bf16 %v517_v25, %v470_v26  ;;  %v1326_v12 = vpack.c.bf16 %v516_v38, %v469_v45 }
 0x21a   :  { %v1421_v51 = vunpack.i.h.bf16 %v1419_v10  ;;  %v1420_v17 = vunpack.i.l.bf16 %v1419_v10  ;;  %v1441_v27 = vunpack.i.h.bf16 %v1439_v14  ;;  %v1440_v28 = vunpack.i.l.bf16 %v1439_v14  ;;  %v936_v60 = vpop.f32.mrb[4].mxu1 }
 0x21b   :  { %v655_v14 = vsel %vm652_vm3, %v1406_v32, %v1416_v43  ;;  %v938_v62 = vpop.f32.mrb[5].mxu1 }
 0x21c   :  { %v422_v18 = vsel %vm417_vm13, %v1420_v17, %v1421_v51  ;;  %v421_v19 = vsel %vm417_vm13, %v1361_v63, %v1420_v17  ;;  %v423_v21 = vsel %vm417_vm13, %v1421_v51, %v416_v52  ;;  %v562_v53 = vsel %vm558_vm0, %v1396_v50, %v1440_v28 }
 0x21d   :  { %v1322_v23 = vpack.c.bf16 %v422_v18, %v1648_v31  ;;  %v604_v24 = vpop.permute.xlu0 %603  ;;  %v1444_v11 = vpop.permute.xlu1 %1443  ;;  %v1304_v13 = vpack.c.bf16 %v421_v19, %v1624_v22  ;;  %v1320_v20 = vpack.c.bf16 %v423_v21, %v1651_v33  ;;  %v608_v31 = vsel %vm605_vm1, %v1391_v15, %v1401_v58 }
 0x21e   :  { %v1446_v35 = vunpack.i.h.bf16 %v1444_v11  ;;  %v1445_v37 = vunpack.i.l.bf16 %v1444_v11  ;;  %v564_v54 = vsel %vm558_vm0, %v1441_v27, %v557_v5  ;;  %v1314_v63 = vpack.c.bf16 %v608_v31, %v561_v57  ;;  %v940_v18 = vpop.f32.mrb[6].mxu1  ;;  %v895_v21 = vpop.f32.mrb[8].mxu0 }
 0x21f   :  { %1305 = vmatprep.subr.bf16.mxu0 %v1304_v13  ;;  %1321 = vmatprep.subr.bf16.mxu1 %v1320_v20  ;;  %v563_v1 = vsel %vm558_vm0, %v1440_v28, %v1441_v27  ;;  %v703_v5 = vsel %vm699_vm2, %v1425_v0, %v1426_v44  ;;  %v702_v50 = vsel %vm699_vm2, %v1411_v36, %v1425_v0  ;;  %v941_v19 = vpop.f32.mrb[7].mxu1  ;;  %v897_v25 = vpop.f32.mrb[9].mxu0 }
 0x220   :  { %1307 = vmatpush1.bf16.msra.mxu0 %v1306_v49  ;;  %1323 = vmatpush1.bf16.msra.mxu1 %v1322_v23  ;;  %v609_v22 = vsel %vm605_vm1, %v1401_v58, %v1445_v37  ;;  %v611_v33 = vsel %vm605_vm1, %v1446_v35, %v604_v24  ;;  %v610_v48 = vsel %vm605_vm1, %v1445_v37, %v1446_v35  ;;  %v899_v23 = vpop.f32.mrb[10].mxu0 }
 0x221   :  { %v651_v46 = vpop.permute.xlu0 %650  ;;  %v1449_v52 = vpop.permute.xlu1 %1448  ;;  %1309 = vmatprep.subr.bf16.mxu0 %v1308_v39  ;;  %1325 = vmatprep.subr.bf16.mxu1 %v1324_v42  ;;  %v1312_v40 = vpack.c.bf16 %v609_v22, %v562_v53  ;;  %v1328_v61 = vpack.c.bf16 %v611_v33, %v564_v54  ;;  %v1330_v6 = vpack.c.bf16 %v610_v48, %v563_v1 }
 0x222   :  { %v1450_v15 = vunpack.i.l.bf16 %v1449_v52  ;;  %v1451_v59 = vunpack.i.h.bf16 %v1449_v52  ;;  %v1318_v36 = vpack.c.bf16 %v702_v50, %v655_v14  ;;  %v900_v24 = vpop.f32.mrb[11].mxu0 }
 0x224   :  { %1311 = vmatpush1.bf16.msra.mxu0 %v1310_v16  ;;  %1327 = vmatpush1.bf16.msra.mxu1 %v1326_v12  ;;  %v656_v55 = vsel %vm652_vm3, %v1416_v43, %v1450_v15  ;;  %v657_v8 = vsel %vm652_vm3, %v1450_v15, %v1451_v59  ;;  %v658_v4 = vsel %vm652_vm3, %v1451_v59, %v651_v46 }
 0x225   :  { %v1454_v2 = vpop.permute.xlu0 %1453  ;;  %1313 = vmatprep.subr.bf16.mxu0 %v1312_v40  ;;  %1329 = vmatprep.subr.bf16.mxu1 %v1328_v61  ;;  %v739_v34 = vpop.permute.xlu1 %738  ;;  %v1316_v3 = vpack.c.bf16 %v703_v5, %v656_v55 }
 0x226   :  { %v1456_v47 = vunpack.i.h.bf16 %v1454_v2  ;;  %v1455_v7 = vunpack.i.l.bf16 %v1454_v2  ;;  %v749_v29 = vsel %vm746_vm4, %v1785_v41, %v739_v34  ;;  %v977_v41 = vpop.f32.mrb[12].mxu0 }
 0x227   :  { %v979_v11 = vpop.f32.mrb[13].mxu0 }
 0x228   :  { %v704_v9 = vsel %vm699_vm2, %v1426_v44, %v1455_v7  ;;  %1315 = vmatpush1.bf16.msra.mxu0 %v1314_v63  ;;  %1331 = vmatpush1.bf16.msra.mxu1 %v1330_v6  ;;  %v705_v10 = vsel %vm699_vm2, %v1455_v7, %v1456_v47  ;;  %v981_v13 = vpop.f32.mrb[14].mxu0 }
 0x229   :  { %v1334_v49 = vpack.c.bf16 %v704_v9, %v657_v8  ;;  %v741_v16 = vpop.permute.xlu0 %740  ;;  %1317 = vmatprep.subr.bf16.mxu0 %v1316_v3  ;;  %v1332_v30 = vpack.c.bf16 %v705_v10, %v658_v4  ;;  %v743_v51 = vpop.permute.xlu1 %742 }
 0x22a   :  { %v750_v17 = vsel %vm746_vm4, %v739_v34, %v741_v16  ;;  %v751_v32 = vsel %vm746_vm4, %v741_v16, %v743_v51  ;;  %v982_v20 = vpop.f32.mrb[15].mxu0 }
 0x22b   :  { %1333 = vmatprep.subr.bf16.mxu1 %v1332_v30 }
 0x22c   :  { %1319 = vmatpush1.bf16.msra.mxu0 %v1318_v36  ;;  %1335 = vmatpush1.bf16.msra.mxu1 %v1334_v49 }
 0x22d   :  { %v745_v57 = vpop.permute.xlu0 %744  ;;  %1075 = vmatprep.subr.mxu0 %v750_v17 }
 0x22e   :  { %v752_v58 = vsel %vm746_vm4, %v743_v51, %v745_v57 }
 0x22f   :  { %1146 = vmatprep.subr.mxu1 %v752_v58 }
 0x230   :  { %1076 = vmatpush1.msra.mxu0 %v749_v29  ;;  %1147 = vmatpush1.msra.mxu1 %v751_v32 }
 0x231   :  { %1286 = vmatmul.mubr.msk.f32.vlgmr.msra.gmra.mrb[16].mxu0 %vm984_vm5, %v1798_v56  ;;  %1287 = vmatmul.mubr.msk.f32.vlgmr.msra.gmra.mrb[10].mxu1 %vm984_vm5, %v1798_v56 }
 0x23a   :  { %v1205_v27 = vpop.permute.xlu1 %1204 }
 0x2e3   :  { %v1054_v26 = vpop.f32.mrb[8].mxu1 }
 0x2e4   :  { %v1055_v28 = vadd.f32 %v1054_v26, %v895_v21  ;;  %v1056_v35 = vpop.f32.mrb[9].mxu1 }
 0x2e5   :  { %v1057_v37 = vadd.f32 %v1056_v35, %v897_v25 }
 0x2e6   :  { %v1207_v38 = vadd.f32 %v1205_v27, %v1055_v28 }
 0x2e7   :  { %v1208_v39 = vadd.f32 %v1205_v27, %v1057_v37 }
 0x2e8   :  { %vm1213_vm6 = vcmp.ge.f32.partialorder %v1207_v38, 0.0  ;;  %v1219_v56 = vmul.f32 0.01, %v1207_v38 }
 0x2e9   :  { %vm1214_vm7 = vcmp.ge.f32.partialorder %v1208_v39, 0.0  ;;  %v1220_v42 = vmul.f32 0.01, %v1208_v39 }
 0x2ea   :  { %v1225_v31 = vsel %vm1213_vm6, %v1207_v38, %v1219_v56 }
 0x2eb   :  { %v1226_v22 = vsel %vm1214_vm7, %v1208_v39, %v1220_v42  ;;  %1231 = vst [vmem:[#allocation7] sm:$0xff] %v1225_v31 }
 0x2ec   :  { %1232 = vst [vmem:[#allocation7 + $0x8] sm:$0xff] %v1226_v22 }
 0x304   :  { %v1125_v33 = vpop.f32.mrb[16].mxu0  ;;  %v1196_v43 = vpop.f32.mrb[10].mxu1 }
 0x305   :  { %v1126_v44 = vadd.f32 %v1125_v33, %v936_v60  ;;  %v1197_v0 = vadd.f32 %v1196_v43, %v977_v41  ;;  %v1127_v45 = vpop.f32.mrb[17].mxu0  ;;  %v1198_v46 = vpop.f32.mrb[11].mxu1 }
 0x306   :  { %v1128_v52 = vadd.f32 %v1127_v45, %v938_v62  ;;  %v1199_v12 = vadd.f32 %v1198_v46, %v979_v11 }
 0x307   :  { %v1209_v15 = vadd.f32 %v1205_v27, %v1126_v44  ;;  %v1211_v53 = vadd.f32 %v1205_v27, %v1197_v0 }
 0x308   :  { %v1210_v54 = vadd.f32 %v1205_v27, %v1128_v52  ;;  %v1212_v48 = vadd.f32 %v1205_v27, %v1199_v12 }
 0x309   :  { %vm1215_vm8 = vcmp.ge.f32.partialorder %v1209_v15, 0.0  ;;  %v1221_v59 = vmul.f32 0.01, %v1209_v15  ;;  %vm1217_vm9 = vcmp.ge.f32.partialorder %v1211_v53, 0.0  ;;  %v1223_v40 = vmul.f32 0.01, %v1211_v53 }
 0x30a   :  { %vm1216_vm10 = vcmp.ge.f32.partialorder %v1210_v54, 0.0  ;;  %v1222_v61 = vmul.f32 0.01, %v1210_v54  ;;  %vm1218_vm11 = vcmp.ge.f32.partialorder %v1212_v48, 0.0  ;;  %v1224_v55 = vmul.f32 0.01, %v1212_v48 }
 0x30b   :  { %v1227_v63 = vsel %vm1215_vm8, %v1209_v15, %v1221_v59  ;;  %v1229_v1 = vsel %vm1217_vm9, %v1211_v53, %v1223_v40 }
 0x30c   :  { %1233 = vst [vmem:[#allocation7 + $0x10] sm:$0xff] %v1227_v63  ;;  %1235 = vst [vmem:[#allocation7 + $0x20] sm:$0xff] %v1229_v1  ;;  %v1228_v2 = vsel %vm1216_vm10, %v1210_v54, %v1222_v61  ;;  %v1230_v6 = vsel %vm1218_vm11, %v1212_v48, %v1224_v55 }
 0x30d   :  { %1234 = vst [vmem:[#allocation7 + $0x18] sm:$0xff] %v1228_v2  ;;  %1236 = vst [vmem:[#allocation7 + $0x28] sm:$0xff] %v1230_v6 }
 0x30e   :  { %1522 = shalt.err (!%p1519_p12)
}
 0x30f   :  { %s1523_s29 = scalar_lea.hbm %s1886_s6, 768 }
 0x310   :  { %p1524_p13 = scmp.ne.s32.totalorder %s1886_s6, %s1523_s29  ;;  %p1527_p0 = scmp.lt.u32.totalorder %s1523_s29, %s1886_s6 }
 0x312   :  { %p1529_p1 = pnand %p1527_p0, %p1524_p13 }
 0x314   :  { %1532 = shalt.err (!%p1529_p1)
}
 0x315   :  { %1246 = dma.vmem_to_hbm [thread:$0]  %s1244_s25, 768, %s1886_s6, [#allocation6]  }
 0x316   :  { %1535 = dma.done.wait [#allocation6], 768  }
 0x317   :  { %1536 = vsyncadd [#allocation6], 4294966528 }
 0x318   :  { %1250 = vsyncpa [#allocation5], 1 }
 0x319   :  { %1251 = vsyncpa [#allocation6], 1 }

</bundles_post_ra>
